<compile_context>
chip_gen: v5e
topology: v5e:2x2
jax: 0.10.0
libtpu: 0.0.40
codegen_flags: <defaults>
</compile_context>

<pallas_src>
import functools
import math

import jax
import jax.numpy as jnp
from jax.experimental import pallas as pl
from jax.experimental.pallas import tpu as pltpu

_LANE = 128
_SUBLANE = 8
_MAX_BATCH_TILE = 256          # fills MXU M on v6e/v7x; 2x128 rows on v5e
_X_TILE_BUDGET = 8 << 20       # bytes per input tile (Pallas double-buffers it)
_FUSED_W_BUDGET = 4 << 20      # max bytes for the tiled (N*F, OUT) weight


# ----------------------------------- kernels -----------------------------------

def _fused_matmul_kernel(x_ref, w_ref, b_ref, o_ref):
  # x_ref: (tb, N*F) tile, w_ref: (N*F, OUT_PAD) pre-scaled by 1/N, b_ref: (1, OUT_PAD)
  y = jnp.dot(x_ref[...], w_ref[...], preferred_element_type=jnp.float32)
  o_ref[...] = (y + b_ref[...].astype(jnp.float32)).astype(o_ref.dtype)


def _pool_linear_kernel(x_ref, w_ref, b_ref, o_ref, acc_ref, *, inv_n):
  # x_ref: (tb, tn, F) tile; acc_ref: (tb, F) f32 running sum over the N axis.
  k = pl.program_id(1)

  @pl.when(k == 0)
  def _():
    acc_ref[...] = jnp.zeros_like(acc_ref)

  # f32 accumulate without materializing a widened copy of the whole tile.
  acc_ref[...] += jnp.sum(x_ref[...], axis=1, dtype=jnp.float32)

  @pl.when(k == pl.num_programs(1) - 1)
  def _():
    pooled = (acc_ref[...] * inv_n).astype(w_ref.dtype)
    y = jnp.dot(pooled, w_ref[...], preferred_element_type=jnp.float32)
    o_ref[...] = (y + b_ref[...].astype(jnp.float32)).astype(o_ref.dtype)


# ----------------------------------- helpers -----------------------------------

def _round_up(v, m):
  return ((v + m - 1) // m) * m


def _pick_tile(total, max_tile, mult):
  """Largest multiple-of-`mult` divisor of `total` that is <= max_tile;
  falls back to `total` (one full block) if none exists."""
  if total <= max_tile:
    return total
  t = (max_tile // mult) * mult
  while t >= mult:
    if total % t == 0:
      return t
    t -= mult
  return total


def _vmem_limit(need_bytes):
  # 2x headroom over the computed footprint, never below the default scoped
  # limit, never above v7x's 64 MiB physical VMEM.
  return int(min(max(2 * need_bytes, 32 << 20), 64 << 20))


# ------------------------------ pallas_call wrapper ------------------------------

def global_avg_pool(x, w, b, *,
                    max_batch_tile=_MAX_BATCH_TILE,
                    x_tile_budget=_X_TILE_BUDGET,
                    fused_w_budget=_FUSED_W_BUDGET):
  """y = mean(x, axis=1) @ w + b.   x: (B, N, F), w: (F, OUT), b: (OUT,)."""
  B, N, F = x.shape
  assert w.shape[0] == F
  OUT = w.shape[1]
  b2 = b.reshape(1, OUT)

  # Lane-dense output: pad OUT up to a multiple of 128, slice back afterwards.
  OUT_PAD = _round_up(OUT, _LANE)
  if OUT_PAD != OUT:
    w = jnp.pad(w, ((0, 0), (0, OUT_PAD - OUT)))
    b2 = jnp.pad(b2, ((0, 0), (0, OUT_PAD - OUT)))

  tb = _pick_tile(B, max_batch_tile, _SUBLANE)
  bt_steps = B // tb

  xbytes = x.dtype.itemsize
  wbytes = w.dtype.itemsize
  bbytes = b2.dtype.itemsize
  out_shape = jax.ShapeDtypeStruct((B, OUT_PAD), x.dtype)

  fused_ok = (F < _LANE
              and N * F * OUT_PAD * wbytes <= fused_w_budget
              and tb * N * F * xbytes <= x_tile_budget)

  if fused_ok:
    # ---- path A: pool + matmul fused into one MXU matmul (small F) ----
    K = N * F
    x2 = x.reshape(B, K)                                   # free row-major view
    w_tiled = (jnp.tile(w, (N, 1)) * (1.0 / N)).astype(w.dtype)   # (K, OUT_PAD)

    flops = 2 * B * K * OUT_PAD + B * OUT_PAD
    bytes_accessed = (x2.size * xbytes + w_tiled.size * wbytes
                      + b2.size * bbytes + B * OUT_PAD * xbytes)
    vmem_need = (2 * tb * K * xbytes + K * OUT_PAD * wbytes
                 + OUT_PAD * bbytes + 2 * tb * OUT_PAD * xbytes)

    out = pl.pallas_call(
        _fused_matmul_kernel,
        grid=(bt_steps,),
        in_specs=[
            pl.BlockSpec((tb, K), lambda i: (i, 0)),         # x tile per step
            pl.BlockSpec((K, OUT_PAD), lambda i: (0, 0)),    # weights, resident
            pl.BlockSpec((1, OUT_PAD), lambda i: (0, 0)),    # bias, resident
        ],
        out_specs=pl.BlockSpec((tb, OUT_PAD), lambda i: (i, 0)),
        out_shape=out_shape,
        compiler_params=pltpu.CompilerParams(
            dimension_semantics=("parallel",),
            vmem_limit_bytes=_vmem_limit(vmem_need)),
        cost_estimate=pl.CostEstimate(
            flops=flops, transcendentals=0, bytes_accessed=bytes_accessed),
    )(x2, w_tiled, b2)
  else:
    # ---- path B: tiled pool (N reduction axis) -> matmul + bias ----
    max_tn = max(_SUBLANE, x_tile_budget // max(1, tb * F * xbytes))
    tn = _pick_tile(N, max_tn, _SUBLANE)
    n_steps = N // tn

    flops = B * N * F + 2 * B * F * OUT_PAD + B * OUT_PAD
    bytes_accessed = (x.size * xbytes + w.size * wbytes
                      + b2.size * bbytes + B * OUT_PAD * xbytes)
    vmem_need = (2 * tb * tn * F * xbytes + F * OUT_PAD * wbytes
                 + OUT_PAD * bbytes + 2 * tb * OUT_PAD * xbytes
                 + tb * F * 4)

    out = pl.pallas_call(
        functools.partial(_pool_linear_kernel, inv_n=1.0 / N),
        grid=(bt_steps, n_steps),
        in_specs=[
            pl.BlockSpec((tb, tn, F), lambda i, k: (i, k, 0)),
            pl.BlockSpec((F, OUT_PAD), lambda i, k: (0, 0)),
            pl.BlockSpec((1, OUT_PAD), lambda i, k: (0, 0)),
        ],
        out_specs=pl.BlockSpec((tb, OUT_PAD), lambda i, k: (i, 0)),
        out_shape=out_shape,
        scratch_shapes=[pltpu.VMEM((tb, F), jnp.float32)],
        compiler_params=pltpu.CompilerParams(
            dimension_semantics=("parallel", "arbitrary"),
            vmem_limit_bytes=_vmem_limit(vmem_need)),
        cost_estimate=pl.CostEstimate(
            flops=flops, transcendentals=0, bytes_accessed=bytes_accessed),
    )(x, w, b2)

  return out[:, :OUT] if OUT_PAD != OUT else out


# ------------------------------------- main -------------------------------------

if __name__ == "__main__":
  key = jax.random.PRNGKey(0)

  # --- test 1: demo shapes (small F -> fused single-matmul path, grid=(1,)) ---
  B, N, IN_F, OUT_F = 16, 16, 32, 128
  k1, k2, k3, k4, k5, k6 = jax.random.split(key, 6)
  x = jax.random.normal(k1, (B, N, IN_F), jnp.float32)
  bound = 1.0 / math.sqrt(IN_F)
  w = jax.random.uniform(k2, (IN_F, OUT_F), jnp.float32, -bound, bound)
  b = jax.random.uniform(k3, (OUT_F,), jnp.float32, -bound, bound)

  out = jax.block_until_ready(global_avg_pool(x, w, b))
  ref = x.mean(axis=1) @ w + b
  assert out.shape == (B, OUT_F), out.shape
  assert jnp.allclose(out, ref, atol=1e-3, rtol=1e-3), \
      float(jnp.max(jnp.abs(out - ref)))

  # --- test 2: pooled path with an N-reduction grid axis and OUT padding ---
  B2, N2, IN2, OUT2 = 16, 32, 128, 64
  x2 = jax.random.normal(k4, (B2, N2, IN2), jnp.float32)
  bound2 = 1.0 / math.sqrt(IN2)
  w2 = jax.random.uniform(k5, (IN2, OUT2), jnp.float32, -bound2, bound2)
  b2 = jax.random.uniform(k6, (OUT2,), jnp.float32, -bound2, bound2)

  # Tiny x-tile budget forces tn < N so the accumulator/init/finalize path runs.
  out2 = jax.block_until_ready(
      global_avg_pool(x2, w2, b2, x_tile_budget=B2 * 8 * IN2 * 4))
  ref2 = x2.mean(axis=1) @ w2 + b2
  assert out2.shape == (B2, OUT2), out2.shape
  assert jnp.allclose(out2, ref2, atol=1e-3, rtol=1e-3), \
      float(jnp.max(jnp.abs(out2 - ref2)))

  print("KERNEL_OK")
</pallas_src>

<mosaic_0001>
module attributes {stable_mosaic.version = 11 : i64} {
  func.func @_fused_matmul_kernel(%arg0: i32, %arg1: memref<16x512xf32, #tpu.memory_space<vmem>>, %arg2: memref<512x128xf32, #tpu.memory_space<vmem>>, %arg3: memref<1x128xf32, #tpu.memory_space<vmem>>, %arg4: memref<16x128xf32, #tpu.memory_space<vmem>>) attributes {dimension_semantics = [#tpu.dimension_semantics<parallel>], iteration_bounds = array<i64: 1>, scalar_prefetch = 0 : i64, scratch_operands = 0 : i64, tpu.core_type = #tpu.core_type<tc>, window_params = [{transform_indices = @transform_0, window_bounds = array<i64: 16, 512>}, {pipeline_mode = #tpu.pipeline_mode<synchronous>, transform_indices = @transform_1, window_bounds = array<i64: 512, 128>}, {pipeline_mode = #tpu.pipeline_mode<synchronous>, transform_indices = @transform_2, window_bounds = array<i64: 1, 128>}, {transform_indices = @transform_3, window_bounds = array<i64: 16, 128>}]} {
    %c0 = arith.constant 0 : index
    %c0_0 = arith.constant 0 : index
    %0 = vector.load %arg1[%c0, %c0_0] : memref<16x512xf32, #tpu.memory_space<vmem>>, vector<16x512xf32>
    %c0_1 = arith.constant 0 : index
    %c0_2 = arith.constant 0 : index
    %1 = vector.load %arg2[%c0_1, %c0_2] : memref<512x128xf32, #tpu.memory_space<vmem>>, vector<512x128xf32>
    %cst = arith.constant dense<0.000000e+00> : vector<16x128xf32>
    %2 = tpu.matmul %0, %1, %cst {dimension_numbers = #tpu.dot_dimension_numbers<[1], [0], [0], [1], [0, 0, 1, 1], [], []>} : vector<16x512xf32>, vector<512x128xf32>, vector<16x128xf32> -> vector<16x128xf32>
    %c0_3 = arith.constant 0 : index
    %c0_4 = arith.constant 0 : index
    %3 = vector.load %arg3[%c0_3, %c0_4] : memref<1x128xf32, #tpu.memory_space<vmem>>, vector<1x128xf32>
    %4 = vector.broadcast %3 : vector<1x128xf32> to vector<16x128xf32>
    %5 = arith.addf %2, %4 : vector<16x128xf32>
    %c0_5 = arith.constant 0 : index
    %c0_6 = arith.constant 0 : index
    %6 = vector.load %arg4[%c0_5, %c0_6] : memref<16x128xf32, #tpu.memory_space<vmem>>, vector<16x128xf32>
    tpu.vector_store %arg4[%c0_5, %c0_6], %5 {strides = array<i32>} : memref<16x128xf32, #tpu.memory_space<vmem>>, vector<16x128xf32>,
    return
  }
  func.func @transform_0(%arg0: i32) -> (i32, i32) {
    %c0_i32 = arith.constant 0 : i32
    %c0_i32_0 = arith.constant 0 : i32
    return %arg0, %c0_i32 : i32, i32
  }
  func.func @transform_1(%arg0: i32) -> (i32, i32) {
    %c0_i32 = arith.constant 0 : i32
    %c0_i32_0 = arith.constant 0 : i32
    %c0_i32_1 = arith.constant 0 : i32
    return %c0_i32, %c0_i32_0 : i32, i32
  }
  func.func @transform_2(%arg0: i32) -> (i32, i32) {
    %c0_i32 = arith.constant 0 : i32
    %c0_i32_0 = arith.constant 0 : i32
    %c0_i32_1 = arith.constant 0 : i32
    return %c0_i32, %c0_i32_0 : i32, i32
  }
  func.func @transform_3(%arg0: i32) -> (i32, i32) {
    %c0_i32 = arith.constant 0 : i32
    %c0_i32_0 = arith.constant 0 : i32
    return %arg0, %c0_i32 : i32, i32
  }
}

</mosaic_0001>

<bundles_post_ra>
// kernel: tpu_custom_call.1
= control target key start
LH: loop header
LB: loop body
LE: loop exit
PB: predicated region body
PF: predicated region fallthrough
CT: control target
= control target key end

     0   :  { %8 = vsyncpa [#allocation3], 0  ;;  %s368_s0 = inlined_call_operand.hbm [shape: f32[16,512], index: 0, kind: input, shape index: {}]   ;;  %s369_s1 = inlined_call_operand.hbm [shape: f32[512,128], index: 1, kind: input, shape index: {}]   ;;  %s370_s2 = inlined_call_operand.vmem [shape: f32[1,128], index: 2, kind: input, shape index: {}]   ;;  %s371_s3 = inlined_call_operand.hbm [shape: f32[16,128], index: 3, kind: output, shape index: {}]  }
   0x1   :  { %9 = vsyncpa [#allocation6], 0 }
   0x2   :  { %10 = vsyncpa [#allocation4], 0  ;;  %s15_s14 = sshll.u32 %s368_s0, 4  ;;  %s323_s15 = smov [#allocation2]   ;;  %s16_s14 = int_to_ptr.hbm [resolvable:$true] %s15_s14 }
   0x3   :  { %s17_s16 = sshll.u32 %s323_s15, 4  ;;  %s28_s19 = sshll.u32 %s369_s1, 4  ;;  %s18_s16 = int_to_ptr.vmem [resolvable:$true] %s17_s16  ;;  %s29_s19 = int_to_ptr.hbm [resolvable:$true] %s28_s19 }
   0x4   :  { %s324_s20 = smov 512   ;;  %s325_s21 = smov 32  }
   0x5   :  { %23 = dma.hbm_to_vmem [thread:$0]  %s16_s14, 1024, %s18_s16, [#allocation3], %s324_s20, %s324_s20, %s325_s21  }
   0x6   :  { %s326_s22 = smov [#allocation5]   ;;  %s327_s24 = smov 128  }
   0x7   :  { %s30_s23 = sshll.u32 %s326_s22, 4  ;;  %s328_s25 = smov 8   ;;  %s31_s23 = int_to_ptr.vmem [resolvable:$true] %s30_s23 }
   0x8   :  { %36 = dma.hbm_to_vmem [thread:$0]  %s29_s19, 8192, %s31_s23, [#allocation6], %s327_s24, %s327_s24, %s328_s25  }
   0x9   :  { %317 = dma.done.wait [#allocation3], 1024  }
   0xa   :  { %318 = vsyncadd [#allocation3], 4294966272 }
   0xb   :  { %319 = dma.done.wait [#allocation6], 8192  }
   0xc   :  { %320 = vsyncadd [#allocation6], 4294959104  ;;  %v102_v0 = vld [vmem:[#allocation5 + $0x178] sm:$0xff]  ;;  %v101_v2 = vld [vmem:[#allocation5 + $0x170] sm:$0xff]  ;;  %s329_s26 = smov [#allocation7]  }
   0xd   :  { %v70_v1 = vld [vmem:[#allocation5 + $0x78] sm:$0xff]  ;;  %169 = vmatpush.msra.mxu2 %v102_v0  ;;  %v69_v4 = vld [vmem:[#allocation5 + $0x70] sm:$0xff]  ;;  %v100_v6 = vld [vmem:[#allocation5 + $0x168] sm:$0xff]  ;;  %s221_s27 = sshll.u32 %s329_s26, 4  ;;  %s222_s27 = int_to_ptr.vmem [resolvable:$true] %s221_s27 }
   0xe   :  { %123 = vmatpush.msra.mxu0 %v70_v1  ;;  %v118_v3 = vld [vmem:[#allocation5 + $0x1f8] sm:$0xff]  ;;  %v117_v7 = vld [vmem:[#allocation5 + $0x1f0] sm:$0xff]  ;;  %v68_v8 = vld [vmem:[#allocation5 + $0x68] sm:$0xff] }
   0xf   :  { %v86_v5 = vld [vmem:[#allocation5 + $0xf8] sm:$0xff]  ;;  %192 = vmatpush.msra.mxu3 %v118_v3  ;;  %170 = vmatpush.msra.mxu2 %v101_v2  ;;  %v85_v9 = vld [vmem:[#allocation5 + $0xf0] sm:$0xff]  ;;  %v116_v10 = vld [vmem:[#allocation5 + $0x1e8] sm:$0xff] }
  0x10   :  { %146 = vmatpush.msra.mxu1 %v86_v5  ;;  %124 = vmatpush.msra.mxu0 %v69_v4  ;;  %v99_v11 = vld [vmem:[#allocation5 + $0x160] sm:$0xff]  ;;  %v84_v13 = vld [vmem:[#allocation5 + $0xe8] sm:$0xff]  ;;  %v98_v16 = vld [vmem:[#allocation5 + $0x158] sm:$0xff] }
  0x11   :  { %193 = vmatpush.msra.mxu3 %v117_v7  ;;  %v67_v12 = vld [vmem:[#allocation5 + $0x60] sm:$0xff]  ;;  %171 = vmatpush.msra.mxu2 %v100_v6  ;;  %v66_v17 = vld [vmem:[#allocation5 + $0x58] sm:$0xff]  ;;  %v97_v20 = vld [vmem:[#allocation5 + $0x150] sm:$0xff] }
  0x12   :  { %147 = vmatpush.msra.mxu1 %v85_v9  ;;  %125 = vmatpush.msra.mxu0 %v68_v8  ;;  %v115_v14 = vld [vmem:[#allocation5 + $0x1e0] sm:$0xff]  ;;  %v114_v18 = vld [vmem:[#allocation5 + $0x1d8] sm:$0xff]  ;;  %v65_v21 = vld [vmem:[#allocation5 + $0x50] sm:$0xff] }
  0x13   :  { %v83_v15 = vld [vmem:[#allocation5 + $0xe0] sm:$0xff]  ;;  %194 = vmatpush.msra.mxu3 %v116_v10  ;;  %172 = vmatpush.msra.mxu2 %v99_v11  ;;  %v82_v19 = vld [vmem:[#allocation5 + $0xd8] sm:$0xff]  ;;  %v113_v22 = vld [vmem:[#allocation5 + $0x1d0] sm:$0xff] }
  0x14   :  { %148 = vmatpush.msra.mxu1 %v84_v13  ;;  %126 = vmatpush.msra.mxu0 %v67_v12  ;;  %v81_v23 = vld [vmem:[#allocation5 + $0xd0] sm:$0xff]  ;;  %v96_v24 = vld [vmem:[#allocation5 + $0x148] sm:$0xff]  ;;  %v95_v28 = vld [vmem:[#allocation5 + $0x140] sm:$0xff] }
  0x15   :  { %195 = vmatpush.msra.mxu3 %v115_v14  ;;  %173 = vmatpush.msra.mxu2 %v98_v16  ;;  %v64_v25 = vld [vmem:[#allocation5 + $0x48] sm:$0xff]  ;;  %v63_v29 = vld [vmem:[#allocation5 + $0x40] sm:$0xff]  ;;  %v94_v32 = vld [vmem:[#allocation5 + $0x138] sm:$0xff] }
  0x16   :  { %149 = vmatpush.msra.mxu1 %v83_v15  ;;  %127 = vmatpush.msra.mxu0 %v66_v17  ;;  %v112_v26 = vld [vmem:[#allocation5 + $0x1c8] sm:$0xff]  ;;  %v111_v30 = vld [vmem:[#allocation5 + $0x1c0] sm:$0xff]  ;;  %v62_v33 = vld [vmem:[#allocation5 + $0x38] sm:$0xff] }
  0x17   :  { %196 = vmatpush.msra.mxu3 %v114_v18  ;;  %174 = vmatpush.msra.mxu2 %v97_v20  ;;  %v80_v27 = vld [vmem:[#allocation5 + $0xc8] sm:$0xff]  ;;  %v79_v31 = vld [vmem:[#allocation5 + $0xc0] sm:$0xff]  ;;  %v110_v34 = vld [vmem:[#allocation5 + $0x1b8] sm:$0xff] }
  0x18   :  { %150 = vmatpush.msra.mxu1 %v82_v19  ;;  %128 = vmatpush.msra.mxu0 %v65_v21  ;;  %v78_v35 = vld [vmem:[#allocation5 + $0xb8] sm:$0xff]  ;;  %v93_v36 = vld [vmem:[#allocation5 + $0x130] sm:$0xff]  ;;  %v92_v40 = vld [vmem:[#allocation5 + $0x128] sm:$0xff] }
  0x19   :  { %197 = vmatpush.msra.mxu3 %v113_v22  ;;  %175 = vmatpush.msra.mxu2 %v96_v24  ;;  %v61_v37 = vld [vmem:[#allocation5 + $0x30] sm:$0xff]  ;;  %v60_v41 = vld [vmem:[#allocation5 + $0x28] sm:$0xff]  ;;  %v91_v44 = vld [vmem:[#allocation5 + $0x120] sm:$0xff] }
  0x1a   :  { %151 = vmatpush.msra.mxu1 %v81_v23  ;;  %129 = vmatpush.msra.mxu0 %v64_v25  ;;  %v109_v38 = vld [vmem:[#allocation5 + $0x1b0] sm:$0xff]  ;;  %v108_v42 = vld [vmem:[#allocation5 + $0x1a8] sm:$0xff]  ;;  %v59_v45 = vld [vmem:[#allocation5 + $0x20] sm:$0xff] }
  0x1b   :  { %198 = vmatpush.msra.mxu3 %v112_v26  ;;  %176 = vmatpush.msra.mxu2 %v95_v28  ;;  %v77_v39 = vld [vmem:[#allocation5 + $0xb0] sm:$0xff]  ;;  %v76_v43 = vld [vmem:[#allocation5 + $0xa8] sm:$0xff]  ;;  %v107_v46 = vld [vmem:[#allocation5 + $0x1a0] sm:$0xff] }
  0x1c   :  { %152 = vmatpush.msra.mxu1 %v80_v27  ;;  %130 = vmatpush.msra.mxu0 %v63_v29  ;;  %v75_v47 = vld [vmem:[#allocation5 + $0xa0] sm:$0xff]  ;;  %v90_v48 = vld [vmem:[#allocation5 + $0x118] sm:$0xff]  ;;  %v89_v52 = vld [vmem:[#allocation5 + $0x110] sm:$0xff] }
  0x1d   :  { %199 = vmatpush.msra.mxu3 %v111_v30  ;;  %177 = vmatpush.msra.mxu2 %v94_v32  ;;  %v58_v49 = vld [vmem:[#allocation5 + $0x18] sm:$0xff]  ;;  %v57_v53 = vld [vmem:[#allocation5 + $0x10] sm:$0xff]  ;;  %v88_v56 = vld [vmem:[#allocation5 + $0x108] sm:$0xff] }
  0x1e   :  { %153 = vmatpush.msra.mxu1 %v79_v31  ;;  %131 = vmatpush.msra.mxu0 %v62_v33  ;;  %v106_v50 = vld [vmem:[#allocation5 + $0x198] sm:$0xff]  ;;  %v105_v54 = vld [vmem:[#allocation5 + $0x190] sm:$0xff]  ;;  %v56_v57 = vld [vmem:[#allocation5 + $0x8] sm:$0xff] }
  0x1f   :  { %200 = vmatpush.msra.mxu3 %v110_v34  ;;  %178 = vmatpush.msra.mxu2 %v93_v36  ;;  %v74_v51 = vld [vmem:[#allocation5 + $0x98] sm:$0xff]  ;;  %v73_v55 = vld [vmem:[#allocation5 + $0x90] sm:$0xff]  ;;  %v104_v58 = vld [vmem:[#allocation5 + $0x188] sm:$0xff] }
  0x20   :  { %154 = vmatpush.msra.mxu1 %v78_v35  ;;  %132 = vmatpush.msra.mxu0 %v61_v37  ;;  %v72_v59 = vld [vmem:[#allocation5 + $0x88] sm:$0xff]  ;;  %v87_v60 = vld [vmem:[#allocation5 + $0x100] sm:$0xff]  ;;  %v49_v62 = vld [vmem:[#allocation2 + $0x10] sm:$0xff] }
  0x21   :  { %201 = vmatpush.msra.mxu3 %v109_v38  ;;  %179 = vmatpush.msra.mxu2 %v92_v40  ;;  %v55_v61 = vld [vmem:[#allocation5] sm:$0xff]  ;;  %v50_v1 = vld [vmem:[#allocation2 + $0x18] sm:$0xff]  ;;  %v48_v3 = vld [vmem:[#allocation2 + $0x8] sm:$0xff] }
  0x22   :  { %155 = vmatpush.msra.mxu1 %v77_v39  ;;  %133 = vmatpush.msra.mxu0 %v60_v41  ;;  %v103_v63 = vld [vmem:[#allocation5 + $0x180] sm:$0xff]  ;;  %v53_v4 = vld [vmem:[#allocation2 + $0x30] sm:$0xff]  ;;  %v54_v6 = vld [vmem:[#allocation2 + $0x38] sm:$0xff] }
  0x23   :  { %202 = vmatpush.msra.mxu3 %v108_v42  ;;  %180 = vmatpush.msra.mxu2 %v91_v44  ;;  %v47_v0 = vld [vmem:[#allocation2] sm:$0xff]  ;;  %v52_v7 = vld [vmem:[#allocation2 + $0x28] sm:$0xff] }
  0x24   :  { %156 = vmatpush.msra.mxu1 %v76_v43  ;;  %134 = vmatpush.msra.mxu0 %v59_v45  ;;  %v71_v2 = vld [vmem:[#allocation5 + $0x80] sm:$0xff] }
  0x25   :  { %203 = vmatpush.msra.mxu3 %v107_v46  ;;  %181 = vmatpush.msra.mxu2 %v90_v48  ;;  %v51_v5 = vld [vmem:[#allocation2 + $0x20] sm:$0xff] }
  0x26   :  { %157 = vmatpush.msra.mxu1 %v75_v47  ;;  %135 = vmatpush.msra.mxu0 %v58_v49  ;;  %v244_v8 = vld [vmem:[%s370_s2] ss:$0 sm:$0xff]  ;;  %s223_s2 = sshll.u32 %s371_s3, 4  ;;  %s224_s2 = int_to_ptr.hbm [resolvable:$true] %s223_s2 }
  0x27   :  { %204 = vmatpush.msra.mxu3 %v106_v50  ;;  %182 = vmatpush.msra.mxu2 %v89_v52 }
  0x28   :  { %158 = vmatpush.msra.mxu1 %v74_v51  ;;  %136 = vmatpush.msra.mxu0 %v57_v53 }
  0x29   :  { %205 = vmatpush.msra.mxu3 %v105_v54  ;;  %183 = vmatpush.msra.mxu2 %v88_v56 }
  0x2a   :  { %159 = vmatpush.msra.mxu1 %v73_v55  ;;  %137 = vmatpush.msra.mxu0 %v56_v57 }
  0x2b   :  { %206 = vmatpush.msra.mxu3 %v104_v58  ;;  %184 = vmatpush.msra.mxu2 %v87_v60 }
  0x2c   :  { %160 = vmatpush.msra.mxu1 %v72_v59  ;;  %138 = vmatpush.msra.mxu0 %v55_v61 }
  0x2d   :  { %185 = vmatmul.f32.vlgmr.msra.gmra.mxu2 %v49_v62  ;;  %207 = vmatpush.msra.mxu3 %v103_v63 }
  0x2e   :  { %139 = vmatmul.f32.vlgmr.msra.gmra.mxu0 %v47_v0  ;;  %208 = vmatmul.f32.vlgmr.msra.gmra.mxu3 %v50_v1 }
  0x2f   :  { %161 = vmatpush.msra.mxu1 %v71_v2 }
  0x30   :  { %162 = vmatmul.f32.vlgmr.msra.gmra.mxu1 %v48_v3 }
  0x35   :  { %188 = vmatmul.f32.gmra.mxu2 %v53_v4 }
  0x36   :  { %142 = vmatmul.f32.gmra.mxu0 %v51_v5  ;;  %211 = vmatmul.f32.gmra.mxu3 %v54_v6 }
  0x38   :  { %165 = vmatmul.f32.gmra.mxu1 %v52_v7 }
  0xab   :  { %v140_v9 = vpop.f32.mrf.mxu0 }
  0xac   :  { %v141_v10 = vadd.f32 %v244_v8, %v140_v9 }
  0xad   :  { %v163_v11 = vpop.f32.mrf.mxu1 }
  0xae   :  { %v164_v12 = vadd.f32 %v163_v11, %v141_v10 }
  0xb0   :  { %v186_v13 = vpop.f32.mrf.mxu2 }
  0xb1   :  { %v187_v14 = vadd.f32 %v186_v13, %v164_v12  ;;  %v209_v15 = vpop.f32.mrf.mxu3 }
  0xb3   :  { %v210_v16 = vadd.f32 %v209_v15, %v187_v14  ;;  %v143_v17 = vpop.f32.mrf.mxu0 }
  0xb4   :  { %v144_v18 = vadd.f32 %v244_v8, %v143_v17 }
  0xb5   :  { %215 = vst [vmem:[#allocation7] sm:$0xff] %v210_v16  ;;  %v166_v19 = vpop.f32.mrf.mxu1 }
  0xb6   :  { %v167_v20 = vadd.f32 %v166_v19, %v144_v18 }
  0xb8   :  { %v189_v21 = vpop.f32.mrf.mxu2 }
  0xb9   :  { %v190_v22 = vadd.f32 %v189_v21, %v167_v20  ;;  %v212_v23 = vpop.f32.mrf.mxu3 }
  0xbb   :  { %v213_v24 = vadd.f32 %v212_v23, %v190_v22 }
  0xbd   :  { %216 = vst [vmem:[#allocation7 + $0x8] sm:$0xff] %v213_v24 }
  0xbe   :  { %229 = dma.vmem_to_hbm [thread:$0]  %s222_s27, 256, %s224_s2, [#allocation4], %s327_s24, %s327_s24, %s328_s25  }
  0xbf   :  { %321 = dma.done.wait [#allocation4], 256  }
  0xc0   :  { %322 = vsyncadd [#allocation4], 4294967040 }
  0xc1   :  { %234 = vsyncpa [#allocation3], 1 }
  0xc2   :  { %235 = vsyncpa [#allocation6], 1 }
  0xc3   :  { %236 = vsyncpa [#allocation4], 1 }

</bundles_post_ra>
